<compile_context>
chip_gen: v7x
topology: tpu7x:2x2x1
jax: 0.10.0
libtpu: 0.0.40
codegen_flags: <defaults>
</compile_context>

<pallas_src>
import functools

import jax
import jax.numpy as jnp
from jax import lax
from jax.experimental import pallas as pl
from jax.experimental.pallas import tpu as pltpu


def _cdiv(a, b):
    return -(-a // b)


def _round_up(x, m):
    return _cdiv(x, m) * m


def gaussian_policy_kernel(xT_ref,
                           w1T_ref, b1_ref,
                           w2T_ref, b2_ref,
                           whT_ref, bh_ref,
                           outT_ref,
                           *, num_actions):
    """One batch tile (lane axis = batch): 2-layer MLP + fused (mean|log_std) head."""
    mm_dtype = w1T_ref.dtype  # f32 (default) or bf16 matmul inputs; f32 accumulate

    x = xT_ref[...]                                                   # (F, tb)

    # layer 1: h = relu(W1^T x + b1)                                  (H, tb)
    h = jnp.dot(w1T_ref[...], x, preferred_element_type=jnp.float32) + b1_ref[...]
    h = jnp.maximum(h, 0.0)

    # layer 2: h = relu(W2^T h + b2)                                  (H, tb)
    h = jnp.dot(w2T_ref[...], h.astype(mm_dtype),
                preferred_element_type=jnp.float32) + b2_ref[...]
    h = jnp.maximum(h, 0.0)

    # fused head: rows [0:A] = mean, rows [A:2A] = log_std            (2A, tb)
    y = jnp.dot(whT_ref[...], h.astype(mm_dtype),
                preferred_element_type=jnp.float32) + bh_ref[...]

    # clamp only the log_std rows
    row = lax.broadcasted_iota(jnp.int32, y.shape, 0)
    outT_ref[...] = jnp.where(row < num_actions, y,
                              jnp.clip(y, -20.0, 2.0)).astype(outT_ref.dtype)


def prepare_params(params, *, use_bf16=False):
    """One-time weight layout plumbing (do NOT call per forward step).

    Transposes all weights to the batch-on-lane orientation, fuses the mean
    and log_std heads into one (2A, H) matrix, and casts to the matmul dtype.
    Returned arrays are materialized device arrays, reused across calls.
    """
    mm = jnp.bfloat16 if use_bf16 else jnp.float32
    w1T = jnp.asarray(params["w1"]).T.astype(mm)                       # (H, F)
    b1 = jnp.asarray(params["b1"]).reshape(-1, 1).astype(jnp.float32)  # (H, 1)
    w2T = jnp.asarray(params["w2"]).T.astype(mm)                       # (H, H)
    b2 = jnp.asarray(params["b2"]).reshape(-1, 1).astype(jnp.float32)  # (H, 1)
    whT = jnp.concatenate([params["wm"], params["ws"]], axis=1).T.astype(mm)   # (2A, H)
    bh = jnp.concatenate([params["bm"], params["bs"]],
                         axis=1).reshape(-1, 1).astype(jnp.float32)    # (2A, 1)
    return dict(w1T=w1T, b1=b1, w2T=w2T, b2=b2, whT=whT, bh=bh)


def _batch_tiling(batch, batch_tile):
    """Pick (tile_width, num_tiles) for the batch (lane) axis."""
    if batch <= 256 and batch <= batch_tile:
        # single full-extent tile: zero lane padding, zero wasted work
        return batch, 1
    # >= 2 grid steps so the "parallel" axis can span both TensorCores on v7x
    n_tiles = max(2, _cdiv(batch, batch_tile))
    tb = _round_up(_cdiv(batch, n_tiles), 128)   # lane-dense, minimal tail
    n_tiles = max(2, _cdiv(batch, tb))
    return tb, n_tiles


@functools.partial(jax.jit, static_argnames=("batch_tile",))
def gaussian_policy_forward(state, prepped, *, batch_tile=2048):
    """Fused GaussianPolicy.forward: returns (mean, log_std)."""
    batch, num_inputs = state.shape
    w1T, b1 = prepped["w1T"], prepped["b1"]
    w2T, b2 = prepped["w2T"], prepped["b2"]
    whT, bh = prepped["whT"], prepped["bh"]

    hidden = w1T.shape[0]
    two_a = whT.shape[0]
    num_actions = two_a // 2
    mm_dtype = w1T.dtype
    assert w1T.shape[1] == num_inputs

    tb, n_tiles = _batch_tiling(batch, batch_tile)
    b_pad = tb * n_tiles

    # stream x^T at native feature width; only the batch (lane) axis may pad
    xT = state.T.astype(mm_dtype)                                  # (F, batch)
    if b_pad != batch:
        xT = jnp.pad(xT, ((0, 0), (0, b_pad - batch)))

    kernel = functools.partial(gaussian_policy_kernel, num_actions=num_actions)

    outT = pl.pallas_call(
        kernel,
        out_shape=jax.ShapeDtypeStruct((two_a, b_pad), jnp.float32),
        grid_spec=pltpu.PrefetchScalarGridSpec(
            num_scalar_prefetch=0,
            grid=(n_tiles,),
            in_specs=[
                # x^T: tiled over batch (pipelined / double-buffered)
                pl.BlockSpec((num_inputs, tb), lambda i: (0, i)),
                # weights & biases: same block every step -> VMEM-resident
                pl.BlockSpec((hidden, num_inputs), lambda i: (0, 0)),
                pl.BlockSpec((hidden, 1), lambda i: (0, 0)),
                pl.BlockSpec((hidden, hidden), lambda i: (0, 0)),
                pl.BlockSpec((hidden, 1), lambda i: (0, 0)),
                pl.BlockSpec((two_a, hidden), lambda i: (0, 0)),
                pl.BlockSpec((two_a, 1), lambda i: (0, 0)),
            ],
            out_specs=pl.BlockSpec((two_a, tb), lambda i: (0, i)),
        ),
        compiler_params=pltpu.CompilerParams(
            dimension_semantics=("parallel",),   # shards batch tiles across TCs on v7x
        ),
    )(xT, w1T, b1, w2T, b2, whT, bh)

    mean = outT[:num_actions, :batch].T
    log_std = outT[num_actions:, :batch].T
    return mean, log_std


def init_params(key, num_inputs, num_actions, hidden_size):
    """Deterministic synthetic init mimicking nn.Linear's U(-1/sqrt(fan_in), +)."""
    def linear(k, fan_in, fan_out):
        kw, kb = jax.random.split(k)
        bound = 1.0 / jnp.sqrt(fan_in)
        w = jax.random.uniform(kw, (fan_in, fan_out), jnp.float32, -bound, bound)
        b = jax.random.uniform(kb, (1, fan_out), jnp.float32, -bound, bound)
        return w, b

    k1, k2, k3, k4 = jax.random.split(key, 4)
    w1, b1 = linear(k1, num_inputs, hidden_size)
    w2, b2 = linear(k2, hidden_size, hidden_size)
    wm, bm = linear(k3, hidden_size, num_actions)
    ws, bs = linear(k4, hidden_size, num_actions)
    return dict(w1=w1, b1=b1, w2=w2, b2=b2, wm=wm, bm=bm, ws=ws, bs=bs)


def reference_forward_f32(state, p):
    """Pure-f32 reference (matches PyTorch semantics)."""
    h = jnp.maximum(state @ p["w1"] + p["b1"], 0.0)
    h = jnp.maximum(h @ p["w2"] + p["b2"], 0.0)
    mean = h @ p["wm"] + p["bm"]
    log_std = jnp.clip(h @ p["ws"] + p["bs"], -20.0, 2.0)
    return mean, log_std


if __name__ == "__main__":
    num_inputs, num_actions, hidden_size = 16, 8, 32
    batch = 8

    key = jax.random.PRNGKey(0)
    k_state, k_params = jax.random.split(key)

    state = jax.random.normal(k_state, (batch, num_inputs), jnp.float32)
    params = init_params(k_params, num_inputs, num_actions, hidden_size)

    # weight layout plumbing happens exactly once, outside the forward loop
    prepped = prepare_params(params, use_bf16=False)

    mean, log_std = gaussian_policy_forward(state, prepped)
    jax.block_until_ready((mean, log_std))

    ref_mean, ref_log_std = reference_forward_f32(state, params)
    assert mean.shape == (batch, num_actions)
    assert log_std.shape == (batch, num_actions)
    assert bool(jnp.all(log_std <= 2.0)) and bool(jnp.all(log_std >= -20.0))
    # tolerance is robust to Mosaic's MXU matmul precision (bf16 passes)
    assert jnp.allclose(mean, ref_mean, atol=5e-2, rtol=5e-2)
    assert jnp.allclose(log_std, ref_log_std, atol=5e-2, rtol=5e-2)

    # second call reuses the cached prepared weights / jitted wrapper
    mean2, log_std2 = gaussian_policy_forward(state, prepped)
    jax.block_until_ready((mean2, log_std2))
    assert jnp.allclose(mean2, mean) and jnp.allclose(log_std2, log_std)

    # exercise the multi-tile (lane-dense, padded-batch) path
    state_big = jax.random.normal(k_state, (300, num_inputs), jnp.float32)
    mean_b, log_std_b = gaussian_policy_forward(state_big, prepped, batch_tile=128)
    jax.block_until_ready((mean_b, log_std_b))
    ref_mean_b, ref_log_std_b = reference_forward_f32(state_big, params)
    assert mean_b.shape == (300, num_actions)
    assert jnp.allclose(mean_b, ref_mean_b, atol=5e-2, rtol=5e-2)
    assert jnp.allclose(log_std_b, ref_log_std_b, atol=5e-2, rtol=5e-2)

    print("KERNEL_OK")
</pallas_src>

<mosaic_0001>
module attributes {stable_mosaic.version = 11 : i64} {
  func.func @gaussian_policy_kernel(%arg0: i32, %arg1: memref<16x8xf32, #tpu.memory_space<vmem>>, %arg2: memref<32x16xf32, #tpu.memory_space<vmem>>, %arg3: memref<32x1xf32, #tpu.memory_space<vmem>>, %arg4: memref<32x32xf32, #tpu.memory_space<vmem>>, %arg5: memref<32x1xf32, #tpu.memory_space<vmem>>, %arg6: memref<16x32xf32, #tpu.memory_space<vmem>>, %arg7: memref<16x1xf32, #tpu.memory_space<vmem>>, %arg8: memref<16x8xf32, #tpu.memory_space<vmem>>) attributes {dimension_semantics = [#tpu.dimension_semantics<parallel>], iteration_bounds = array<i64: 1>, scalar_prefetch = 0 : i64, scratch_operands = 0 : i64, tpu.core_type = #tpu.core_type<tc>, window_params = [{transform_indices = @transform_0, window_bounds = array<i64: 16, 8>}, {pipeline_mode = #tpu.pipeline_mode<synchronous>, transform_indices = @transform_1, window_bounds = array<i64: 32, 16>}, {pipeline_mode = #tpu.pipeline_mode<synchronous>, transform_indices = @transform_2, window_bounds = array<i64: 32, 1>}, {pipeline_mode = #tpu.pipeline_mode<synchronous>, transform_indices = @transform_3, window_bounds = array<i64: 32, 32>}, {pipeline_mode = #tpu.pipeline_mode<synchronous>, transform_indices = @transform_4, window_bounds = array<i64: 32, 1>}, {pipeline_mode = #tpu.pipeline_mode<synchronous>, transform_indices = @transform_5, window_bounds = array<i64: 16, 32>}, {pipeline_mode = #tpu.pipeline_mode<synchronous>, transform_indices = @transform_6, window_bounds = array<i64: 16, 1>}, {transform_indices = @transform_7, window_bounds = array<i64: 16, 8>}]} {
    %c0 = arith.constant 0 : index
    %c0_0 = arith.constant 0 : index
    %0 = vector.load %arg1[%c0, %c0_0] : memref<16x8xf32, #tpu.memory_space<vmem>>, vector<16x8xf32>
    %c0_1 = arith.constant 0 : index
    %c0_2 = arith.constant 0 : index
    %1 = vector.load %arg2[%c0_1, %c0_2] : memref<32x16xf32, #tpu.memory_space<vmem>>, vector<32x16xf32>
    %cst = arith.constant dense<0.000000e+00> : vector<32x8xf32>
    %2 = tpu.matmul %1, %0, %cst {dimension_numbers = #tpu.dot_dimension_numbers<[1], [0], [0], [1], [0, 0, 1, 1], [], []>} : vector<32x16xf32>, vector<16x8xf32>, vector<32x8xf32> -> vector<32x8xf32>
    %c0_3 = arith.constant 0 : index
    %c0_4 = arith.constant 0 : index
    %3 = vector.load %arg3[%c0_3, %c0_4] : memref<32x1xf32, #tpu.memory_space<vmem>>, vector<32x1xf32>
    %4 = vector.broadcast %3 : vector<32x1xf32> to vector<32x8xf32>
    %5 = arith.addf %2, %4 : vector<32x8xf32>
    %cst_5 = arith.constant 0.000000e+00 : f32
    %6 = vector.broadcast %cst_5 : f32 to vector<32x8xf32>
    %7 = arith.maximumf %5, %6 : vector<32x8xf32>
    %c0_6 = arith.constant 0 : index
    %c0_7 = arith.constant 0 : index
    %8 = vector.load %arg4[%c0_6, %c0_7] : memref<32x32xf32, #tpu.memory_space<vmem>>, vector<32x32xf32>
    %cst_8 = arith.constant dense<0.000000e+00> : vector<32x8xf32>
    %9 = tpu.matmul %8, %7, %cst_8 {dimension_numbers = #tpu.dot_dimension_numbers<[1], [0], [0], [1], [0, 0, 1, 1], [], []>} : vector<32x32xf32>, vector<32x8xf32>, vector<32x8xf32> -> vector<32x8xf32>
    %c0_9 = arith.constant 0 : index
    %c0_10 = arith.constant 0 : index
    %10 = vector.load %arg5[%c0_9, %c0_10] : memref<32x1xf32, #tpu.memory_space<vmem>>, vector<32x1xf32>
    %11 = vector.broadcast %10 : vector<32x1xf32> to vector<32x8xf32>
    %12 = arith.addf %9, %11 : vector<32x8xf32>
    %cst_11 = arith.constant 0.000000e+00 : f32
    %13 = vector.broadcast %cst_11 : f32 to vector<32x8xf32>
    %14 = arith.maximumf %12, %13 : vector<32x8xf32>
    %c0_12 = arith.constant 0 : index
    %c0_13 = arith.constant 0 : index
    %15 = vector.load %arg6[%c0_12, %c0_13] : memref<16x32xf32, #tpu.memory_space<vmem>>, vector<16x32xf32>
    %cst_14 = arith.constant dense<0.000000e+00> : vector<16x8xf32>
    %16 = tpu.matmul %15, %14, %cst_14 {dimension_numbers = #tpu.dot_dimension_numbers<[1], [0], [0], [1], [0, 0, 1, 1], [], []>} : vector<16x32xf32>, vector<32x8xf32>, vector<16x8xf32> -> vector<16x8xf32>
    %c0_15 = arith.constant 0 : index
    %c0_16 = arith.constant 0 : index
    %17 = vector.load %arg7[%c0_15, %c0_16] : memref<16x1xf32, #tpu.memory_space<vmem>>, vector<16x1xf32>
    %18 = vector.broadcast %17 : vector<16x1xf32> to vector<16x8xf32>
    %19 = arith.addf %16, %18 : vector<16x8xf32>
    %20 = tpu.iota {dimensions = array<i32: 0>} : vector<16x8xi32>
    %c8_i32 = arith.constant 8 : i32
    %21 = vector.broadcast %c8_i32 : i32 to vector<16x8xi32>
    %22 = arith.cmpi slt, %20, %21 : vector<16x8xi32>
    %cst_17 = arith.constant -2.000000e+01 : f32
    %cst_18 = arith.constant 2.000000e+00 : f32
    %23 = vector.broadcast %cst_17 : f32 to vector<16x8xf32>
    %24 = arith.maximumf %23, %19 : vector<16x8xf32>
    %25 = vector.broadcast %cst_18 : f32 to vector<16x8xf32>
    %26 = arith.minimumf %25, %24 : vector<16x8xf32>
    %27 = arith.select %22, %19, %26 : vector<16x8xi1>, vector<16x8xf32>
    %c0_19 = arith.constant 0 : index
    %c0_20 = arith.constant 0 : index
    %28 = vector.load %arg8[%c0_19, %c0_20] : memref<16x8xf32, #tpu.memory_space<vmem>>, vector<16x8xf32>
    tpu.vector_store %arg8[%c0_19, %c0_20], %27 {strides = array<i32>} : memref<16x8xf32, #tpu.memory_space<vmem>>, vector<16x8xf32>,
    return
  }
  func.func @transform_0(%arg0: i32) -> (i32, i32) {
    %c0_i32 = arith.constant 0 : i32
    %c0_i32_0 = arith.constant 0 : i32
    return %c0_i32, %arg0 : i32, i32
  }
  func.func @transform_1(%arg0: i32) -> (i32, i32) {
    %c0_i32 = arith.constant 0 : i32
    %c0_i32_0 = arith.constant 0 : i32
    %c0_i32_1 = arith.constant 0 : i32
    return %c0_i32, %c0_i32_0 : i32, i32
  }
  func.func @transform_2(%arg0: i32) -> (i32, i32) {
    %c0_i32 = arith.constant 0 : i32
    %c0_i32_0 = arith.constant 0 : i32
    %c0_i32_1 = arith.constant 0 : i32
    return %c0_i32, %c0_i32_0 : i32, i32
  }
  func.func @transform_3(%arg0: i32) -> (i32, i32) {
    %c0_i32 = arith.constant 0 : i32
    %c0_i32_0 = arith.constant 0 : i32
    %c0_i32_1 = arith.constant 0 : i32
    return %c0_i32, %c0_i32_0 : i32, i32
  }
  func.func @transform_4(%arg0: i32) -> (i32, i32) {
    %c0_i32 = arith.constant 0 : i32
    %c0_i32_0 = arith.constant 0 : i32
    %c0_i32_1 = arith.constant 0 : i32
    return %c0_i32, %c0_i32_0 : i32, i32
  }
  func.func @transform_5(%arg0: i32) -> (i32, i32) {
    %c0_i32 = arith.constant 0 : i32
    %c0_i32_0 = arith.constant 0 : i32
    %c0_i32_1 = arith.constant 0 : i32
    return %c0_i32, %c0_i32_0 : i32, i32
  }
  func.func @transform_6(%arg0: i32) -> (i32, i32) {
    %c0_i32 = arith.constant 0 : i32
    %c0_i32_0 = arith.constant 0 : i32
    %c0_i32_1 = arith.constant 0 : i32
    return %c0_i32, %c0_i32_0 : i32, i32
  }
  func.func @transform_7(%arg0: i32) -> (i32, i32) {
    %c0_i32 = arith.constant 0 : i32
    %c0_i32_0 = arith.constant 0 : i32
    return %c0_i32, %arg0 : i32, i32
  }
}

</mosaic_0001>

<bundles_post_ra>
// kernel: gaussian_policy_forward.1
= control target key start
LH: loop header
LB: loop body
LE: loop exit
PB: predicated region body
PF: predicated region fallthrough
CT: control target
= control target key end

     0   :  { %vm56_vm0 = vcmask 130048   ;;  %v489_v3 = vmov 0   ;;  %vm186_vm1 = vcmask 261120   ;;  %vm394_vm2 = vcmask 64512   ;;  %s612_s0 = inlined_call_operand.vmem [shape: f32[16,8], index: 0, kind: input, shape index: {}]   ;;  %s613_s1 = inlined_call_operand.vmem [shape: f32[32,16], index: 1, kind: input, shape index: {}]   ;;  %s614_s2 = inlined_call_operand.vmem [shape: f32[32,1], index: 2, kind: input, shape index: {}]   ;;  %s615_s4 = inlined_call_operand.vmem [shape: f32[32,1], index: 4, kind: input, shape index: {}]   ;;  %s616_s6 = inlined_call_operand.vmem [shape: f32[16,1], index: 6, kind: input, shape index: {}]   ;;  %s617_s3 = inlined_call_operand.vmem [shape: f32[32,32], index: 3, kind: input, shape index: {}]   ;;  %s618_s5 = inlined_call_operand.vmem [shape: f32[16,32], index: 5, kind: input, shape index: {}]   ;;  %s619_s7 = inlined_call_operand.vmem [shape: f32[16,8], index: 7, kind: output, shape index: {}]  }
   0x1   :  { %v26_v0 = vld [vmem:[%s612_s0] sm:$0xff]  ;;  %v27_v1 = vld [vmem:[%s612_s0 + $0x8] sm:$0xff]  ;;  %487 = vset.pattern.permute.xlu0 %v489_v3  ;;  %488 = vset.pattern.permute.xlu1 %v489_v3  ;;  %v34_v6 = vld [vmem:[%s614_s2 + $0x10] sm:$0xff] }
   0x2   :  { %v28_v2 = vld [vmem:[%s613_s1] sm:$0xff]  ;;  %v466_v4 = vpack.c.bf16 %v27_v1, %v26_v0  ;;  %v29_v7 = vld [vmem:[%s613_s1 + $0x8] sm:$0xff]  ;;  %48 = vperm.xlu1 %488, %v34_v6   ;;  %v30_v9 = vld [vmem:[%s613_s1 + $0x10] sm:$0xff] }
   0x3   :  { %435 = vmatprep.mubr.msk.f32.mxu0 %vm56_vm0, %v28_v2  ;;  %v32_v5 = vld [vmem:[%s614_s2] sm:$0xff]  ;;  %v33_v8 = vld [vmem:[%s614_s2 + $0x8] sm:$0xff]  ;;  %v35_v10 = vld [vmem:[%s614_s2 + $0x18] sm:$0xff] }
   0x4   :  { %467 = vmatprep.subr.bf16.mxu0 %v466_v4  ;;  %38 = vperm.xlu0 %487, %v32_v5   ;;  %v31_v11 = vld [vmem:[%s613_s1 + $0x18] sm:$0xff]  ;;  %v162_v12 = vld [vmem:[%s615_s4] sm:$0xff]  ;;  %v163_v13 = vld [vmem:[%s615_s4 + $0x8] sm:$0xff] }
   0x5   :  { %469 = vmatpush3.bf16.msra.mxu0 %v466_v4  ;;  %v164_v14 = vld [vmem:[%s615_s4 + $0x10] sm:$0xff]  ;;  %v165_v15 = vld [vmem:[%s615_s4 + $0x18] sm:$0xff]  ;;  %v291_v16 = vld [vmem:[%s616_s6 + $0x8] sm:$0xff] }
   0x6   :  { %53 = vperm.xlu1 %488, %v35_v10   ;;  %v290_v17 = vld [vmem:[%s616_s6] sm:$0xff]  ;;  %v159_v37 = vld [vmem:[%s617_s3 + $0x8] sm:$0xff]  ;;  %v160_v38 = vld [vmem:[%s617_s3 + $0x10] sm:$0xff] }
   0x7   :  { %v158_v18 = vld [vmem:[%s617_s3] sm:$0xff]  ;;  %v161_v39 = vld [vmem:[%s617_s3 + $0x18] sm:$0xff]  ;;  %v289_v59 = vld [vmem:[%s618_s5 + $0x8] sm:$0xff] }
   0x8   :  { %436 = vmatmul.mubr.msk.f32.vlgmr.msra.gmra.mrb[0].mxu0 %vm56_vm0, %v29_v7  ;;  %43 = vperm.xlu0 %487, %v33_v8   ;;  %v288_v40 = vld [vmem:[%s618_s5] sm:$0xff] }
   0x9   :  { %438 = vmatprep.mubr.msk.f32.mxu0 %vm56_vm0, %v30_v9  ;;  %449 = vmatprep.mubr.msk.f32.mxu1 %vm186_vm1, %v158_v18 }
   0xa   :  { %173 = vperm.xlu1 %488, %v163_v13  }
   0xc   :  { %439 = vmatmul.mubr.msk.f32.gmra.mrb[2].mxu0 %vm56_vm0, %v31_v11  ;;  %168 = vperm.xlu0 %487, %v162_v12  }
   0xd   :  { %463 = vmatprep.mubr.msk.f32.mxu0 %vm186_vm1, %v288_v40 }
   0xe   :  { %183 = vperm.xlu1 %488, %v165_v15  }
  0x10   :  { %178 = vperm.xlu0 %487, %v164_v14  }
  0x12   :  { %294 = vperm.xlu1 %488, %v290_v17  }
  0x14   :  { %299 = vperm.xlu0 %487, %v291_v16  }
  0x81   :  { %v49_v20 = vpop.permute.xlu1 %48 }
  0x83   :  { %v39_v19 = vpop.permute.xlu0 %38 }
  0x85   :  { %v54_v27 = vpop.permute.xlu1 %53 }
  0x87   :  { %v44_v21 = vpop.permute.xlu0 %43 }
  0x89   :  { %v174_v41 = vpop.permute.xlu1 %173 }
  0x8b   :  { %v169_v42 = vpop.permute.xlu0 %168 }
  0x8d   :  { %v184_v48 = vpop.permute.xlu1 %183 }
  0x8f   :  { %v179_v51 = vpop.permute.xlu0 %178 }
  0x91   :  { %v295_v62 = vpop.permute.xlu1 %294 }
  0x93   :  { %v300_v60 = vpop.permute.xlu0 %299 }
  0xdb   :  { %v437_v22 = vpop.f32.mrb[0].mxu0 }
  0xdc   :  { %v141_v23 = vadd.f32 %v437_v22, %v44_v21  ;;  %v135_v24 = vpop.f32.mrb[1].mxu0 }
  0xdd   :  { %v136_v25 = vadd.f32 %v135_v24, %v39_v19 }
  0xde   :  { %v155_v26 = vmax.f32 %v141_v23, 0.0 }
  0xdf   :  { %v154_v28 = vmax.f32 %v136_v25, 0.0  ;;  %v440_v29 = vpop.f32.mrb[2].mxu0 }
  0xe0   :  { %v151_v30 = vadd.f32 %v440_v29, %v54_v27  ;;  %v145_v31 = vpop.f32.mrb[3].mxu0 }
  0xe1   :  { %v146_v32 = vadd.f32 %v145_v31, %v49_v20  ;;  %v470_v33 = vpack.c.bf16 %v155_v26, %v154_v28 }
  0xe2   :  { %v157_v34 = vmax.f32 %v151_v30, 0.0 }
  0xe3   :  { %v156_v35 = vmax.f32 %v146_v32, 0.0  ;;  %471 = vmatprep.subr.bf16.mxu1 %v470_v33 }
  0xe4   :  { %473 = vmatpush3.bf16.msra.mxu1 %v470_v33 }
  0xe5   :  { %v474_v36 = vpack.c.bf16 %v157_v34, %v156_v35 }
  0xe7   :  { %475 = vmatprep.subr.bf16.mxu1 %v474_v36 }
  0xe8   :  { %477 = vmatpush3.bf16.msra.mxu1 %v474_v36 }
  0xeb   :  { %450 = vmatmul.mubr.msk.f32.vlgmr.msra.gmra.mrb[0].mxu1 %vm186_vm1, %v159_v37 }
  0xec   :  { %452 = vmatprep.mubr.msk.f32.mxu1 %vm186_vm1, %v160_v38 }
  0xef   :  { %453 = vmatmul.mubr.msk.f32.gmra.mrb[2].mxu1 %vm186_vm1, %v161_v39 }
 0x1be   :  { %v451_v43 = vpop.f32.mrb[0].mxu1 }
 0x1bf   :  { %v271_v44 = vadd.f32 %v451_v43, %v174_v41  ;;  %v265_v45 = vpop.f32.mrb[1].mxu1 }
 0x1c0   :  { %v266_v46 = vadd.f32 %v265_v45, %v169_v42 }
 0x1c1   :  { %v285_v47 = vmax.f32 %v271_v44, 0.0 }
 0x1c2   :  { %v284_v49 = vmax.f32 %v266_v46, 0.0  ;;  %v454_v50 = vpop.f32.mrb[2].mxu1 }
 0x1c3   :  { %v281_v52 = vadd.f32 %v454_v50, %v184_v48  ;;  %v275_v53 = vpop.f32.mrb[3].mxu1 }
 0x1c4   :  { %v478_v54 = vpack.c.bf16 %v285_v47, %v284_v49  ;;  %v276_v55 = vadd.f32 %v275_v53, %v179_v51 }
 0x1c5   :  { %v287_v56 = vmax.f32 %v281_v52, 0.0 }
 0x1c6   :  { %v286_v57 = vmax.f32 %v276_v55, 0.0  ;;  %479 = vmatprep.subr.bf16.mxu0 %v478_v54 }
 0x1c7   :  { %481 = vmatpush3.bf16.msra.mxu0 %v478_v54 }
 0x1c8   :  { %v482_v58 = vpack.c.bf16 %v287_v56, %v286_v57 }
 0x1ca   :  { %483 = vmatprep.subr.bf16.mxu0 %v482_v58 }
 0x1cb   :  { %485 = vmatpush3.bf16.msra.mxu0 %v482_v58 }
 0x1ce   :  { %464 = vmatmul.mubr.msk.f32.vlgmr.msra.gmra.mrb[4].mxu0 %vm186_vm1, %v289_v59 }
 0x2a1   :  { %v465_v61 = vpop.f32.mrb[4].mxu0 }
 0x2a2   :  { %v380_v63 = vadd.f32 %v465_v61, %v300_v60  ;;  %v374_v0 = vpop.f32.mrb[5].mxu0 }
 0x2a3   :  { %v375_v1 = vadd.f32 %v374_v0, %v295_v62 }
 0x2a4   :  { %v389_v2 = vmax.f32 %v380_v63, -20.0 }
 0x2a5   :  { %395 = vst.msk [vmem:[%s619_s7] sm:$0xff] %vm394_vm2, %v375_v1 }
 0x2a6   :  { %v391_v3 = vmin.f32 %v389_v2, 2.0 }
 0x2a8   :  { %396 = vst.msk [vmem:[%s619_s7 + $0x8] sm:$0xff] %vm394_vm2, %v391_v3 }

</bundles_post_ra>
